<compile_context>
chip_gen: v7x
topology: tpu7x:2x2x1
jax: 0.10.0
libtpu: 0.0.40
codegen_flags: <defaults>
</compile_context>

<pallas_src>
import jax
import jax.numpy as jnp
from jax.experimental import pallas as pl
from jax.experimental.pallas import tpu as pltpu

LN_EPS = 1e-5  # nn.LayerNorm default


def _round_up(x: int, m: int) -> int:
    return ((x + m - 1) // m) * m


def _tpu_generation() -> str:
    try:
        kind = jax.devices()[0].device_kind.lower()
    except Exception:
        return "unknown"
    if "v7" in kind or "7x" in kind:
        return "v7x"
    if "v6" in kind:
        return "v6e"
    if "v5" in kind:
        return "v5e"
    return "unknown"


def _vmem_capacity_bytes(gen: str) -> int:
    """Physical VMEM per TensorCore; generation-aware fallback."""
    try:
        cap = int(pltpu.get_tpu_info().vmem_capacity_bytes)
        if cap > 0:
            return cap
    except Exception:
        pass
    # v7x has 64 MiB/TC; v5e/v6e have 128 MiB.
    return 64 * 1024 * 1024 if gen == "v7x" else 128 * 1024 * 1024


def _tile_params(gen: str):
    """(per-step HBM I/O byte target, hard row cap, TensorCores per chip)."""
    if gen == "v7x":
        # ~3.2 TB/s HBM: amortize the ~0.35us/step pipeline overhead with big steps.
        return 24 * 1024 * 1024, 4096, 2
    if gen == "v5e":
        # ~0.8 TB/s HBM: 512-row tiles already sit at ~85% of roofline.
        return 6 * 1024 * 1024, 512, 1
    # v6e / unknown.
    return 12 * 1024 * 1024, 1024, 1


def _row_tile_limits(d: int, itemsize: int, vmem_budget_bytes: int):
    """Sublane quantum and the largest VMEM-safe row tile."""
    sublane = max(8, 32 // itemsize)  # 8 for f32, 16 for bf16, 32 for int8/fp8
    # Per tile row: double-buffered windows for 2 inputs + 1 output, plus ~6 f32
    # temp rows (s, centered, products + slack) inside the kernel.
    bytes_per_row = 2 * 3 * d * itemsize + 6 * d * 4
    vmem_rows = max(sublane, (vmem_budget_bytes // bytes_per_row // sublane) * sublane)
    return sublane, int(vmem_rows)


def addnorm_kernel(x_ref, r_ref, gb_ref, o_ref):
    # x_ref/r_ref/o_ref: (row_tile, D); gb_ref: (2, D) = [gamma; beta]
    s = x_ref[...].astype(jnp.float32) + r_ref[...].astype(jnp.float32)
    inv_d = jnp.float32(1.0 / s.shape[-1])
    mean = jnp.sum(s, axis=-1, keepdims=True) * inv_d
    centered = s - mean
    var = jnp.sum(centered * centered, axis=-1, keepdims=True) * inv_d
    inv = jax.lax.rsqrt(var + LN_EPS)
    g = gb_ref[0:1, :].astype(jnp.float32)
    b = gb_ref[1:2, :].astype(jnp.float32)
    o_ref[...] = (centered * inv * g + b).astype(o_ref.dtype)


def add_norm(x, residual, gamma, beta, *, row_tile=None):
    """x, residual: (B, S, D); gamma, beta: (D,). Returns (B, S, D)."""
    B, S, D = x.shape
    rows = B * S
    itemsize = jnp.dtype(x.dtype).itemsize

    gen = _tpu_generation()
    vmem_cap = _vmem_capacity_bytes(gen)
    vmem_limit = int(min(96 * 1024 * 1024, int(0.75 * vmem_cap)))
    target_io_bytes, row_cap, num_tc = _tile_params(gen)

    sublane, vmem_max_rows = _row_tile_limits(D, itemsize, vmem_limit // 2)

    if row_tile is None:
        # 2 reads + 1 write per row per step.
        io_rows = max(sublane, target_io_bytes // max(1, 3 * D * itemsize))
        row_tile = min(row_cap, vmem_max_rows, int(io_rows), _round_up(rows, sublane))
        row_tile = max(sublane, (row_tile // sublane) * sublane)
    else:
        # Clamp caller-provided tiles into the VMEM budget instead of failing.
        row_tile = max(sublane, (int(row_tile) // sublane) * sublane)
        row_tile = min(row_tile, vmem_max_rows)

    # Multi-TensorCore parts (v7x): keep >= 2 grid steps per core so the
    # "parallel" axis is actually shared; otherwise one core idles.
    if num_tc > 1:
        per_core = _round_up(pl.cdiv(rows, 2 * num_tc), sublane)
        row_tile = max(sublane, min(row_tile, per_core))

    x2 = x.reshape(rows, D)
    r2 = residual.reshape(rows, D)
    gb = jnp.stack([gamma, beta], axis=0)  # (2, D), resident in VMEM across the grid

    grid = (pl.cdiv(rows, row_tile),)

    out = pl.pallas_call(
        addnorm_kernel,
        out_shape=jax.ShapeDtypeStruct((rows, D), x.dtype),
        grid_spec=pltpu.PrefetchScalarGridSpec(
            num_scalar_prefetch=0,
            grid=grid,
            in_specs=[
                pl.BlockSpec((row_tile, D), lambda i: (i, 0)),
                pl.BlockSpec((row_tile, D), lambda i: (i, 0)),
                pl.BlockSpec((2, D), lambda i: (0, 0)),
            ],
            out_specs=pl.BlockSpec((row_tile, D), lambda i: (i, 0)),
        ),
        compiler_params=pltpu.CompilerParams(
            dimension_semantics=("parallel",),
            vmem_limit_bytes=vmem_limit,
        ),
    )(x2, r2, gb)

    return out.reshape(B, S, D)


def add_norm_ref(x, residual, gamma, beta):
    s = (x + residual).astype(jnp.float32)
    mean = jnp.mean(s, axis=-1, keepdims=True)
    var = jnp.mean((s - mean) ** 2, axis=-1, keepdims=True)
    y = (s - mean) * jax.lax.rsqrt(var + LN_EPS) * gamma + beta
    return y.astype(x.dtype)


if __name__ == "__main__":
    key = jax.random.PRNGKey(0)

    # Case 1: module-spec shapes (batch=2, seq=8, d_model=32) -> small-D path.
    B, S, D = 2, 8, 32
    kx, kr = jax.random.split(key)
    x = jax.random.normal(kx, (B, S, D), dtype=jnp.float32)
    residual = jax.random.normal(kr, (B, S, D), dtype=jnp.float32)
    gamma = 1.0 + 0.01 * jnp.arange(D, dtype=jnp.float32)
    beta = 0.01 * jnp.arange(D, dtype=jnp.float32)

    out = jax.block_until_ready(add_norm(x, residual, gamma, beta))
    ref = add_norm_ref(x, residual, gamma, beta)
    assert out.shape == (B, S, D)
    assert jnp.allclose(out, ref, atol=1e-5, rtol=1e-5), "mismatch vs reference (case 1)"

    # Case 2: lane-dense D=128 with a ragged row count -> masked last-block path.
    B2, S2, D2 = 1, 5, 128
    kx2, kr2 = jax.random.split(jax.random.PRNGKey(1))
    x2 = jax.random.normal(kx2, (B2, S2, D2), dtype=jnp.float32)
    r2 = jax.random.normal(kr2, (B2, S2, D2), dtype=jnp.float32)
    g2 = 1.0 + 0.001 * jnp.arange(D2, dtype=jnp.float32)
    b2 = 0.001 * jnp.arange(D2, dtype=jnp.float32)

    out2 = jax.block_until_ready(add_norm(x2, r2, g2, b2))
    ref2 = add_norm_ref(x2, r2, g2, b2)
    assert out2.shape == (B2, S2, D2)
    assert jnp.allclose(out2, ref2, atol=1e-5, rtol=1e-5), "mismatch vs reference (case 2)"

    print("KERNEL_OK")
</pallas_src>

<mosaic_0001>
module attributes {stable_mosaic.version = 11 : i64} {
  func.func @addnorm_kernel(%arg0: i32, %arg1: memref<16x32xf32, #tpu.memory_space<vmem>>, %arg2: memref<16x32xf32, #tpu.memory_space<vmem>>, %arg3: memref<2x32xf32, #tpu.memory_space<vmem>>, %arg4: memref<16x32xf32, #tpu.memory_space<vmem>>) attributes {dimension_semantics = [#tpu.dimension_semantics<parallel>], iteration_bounds = array<i64: 1>, scalar_prefetch = 0 : i64, scratch_operands = 0 : i64, tpu.core_type = #tpu.core_type<tc>, window_params = [{transform_indices = @transform_0, window_bounds = array<i64: 16, 32>}, {transform_indices = @transform_1, window_bounds = array<i64: 16, 32>}, {pipeline_mode = #tpu.pipeline_mode<synchronous>, transform_indices = @transform_2, window_bounds = array<i64: 2, 32>}, {transform_indices = @transform_3, window_bounds = array<i64: 16, 32>}]} {
    %c0 = arith.constant 0 : index
    %c0_0 = arith.constant 0 : index
    %0 = vector.load %arg1[%c0, %c0_0] : memref<16x32xf32, #tpu.memory_space<vmem>>, vector<16x32xf32>
    %c0_1 = arith.constant 0 : index
    %c0_2 = arith.constant 0 : index
    %1 = vector.load %arg2[%c0_1, %c0_2] : memref<16x32xf32, #tpu.memory_space<vmem>>, vector<16x32xf32>
    %2 = arith.addf %0, %1 : vector<16x32xf32>
    %cst = arith.constant dense<0.000000e+00> : vector<16xf32>
    %3 = vector.multi_reduction <add>, %2, %cst [1] : vector<16x32xf32> to vector<16xf32>
    %4 = vector.shape_cast %3 : vector<16xf32> to vector<16x1xf32>
    %cst_3 = arith.constant 3.125000e-02 : f32
    %5 = vector.broadcast %cst_3 : f32 to vector<16x1xf32>
    %6 = arith.mulf %4, %5 : vector<16x1xf32>
    %7 = vector.broadcast %6 : vector<16x1xf32> to vector<16x32xf32>
    %8 = arith.subf %2, %7 : vector<16x32xf32>
    %9 = arith.mulf %8, %8 : vector<16x32xf32>
    %cst_4 = arith.constant dense<0.000000e+00> : vector<16xf32>
    %10 = vector.multi_reduction <add>, %9, %cst_4 [1] : vector<16x32xf32> to vector<16xf32>
    %11 = vector.shape_cast %10 : vector<16xf32> to vector<16x1xf32>
    %cst_5 = arith.constant 3.125000e-02 : f32
    %12 = vector.broadcast %cst_5 : f32 to vector<16x1xf32>
    %13 = arith.mulf %11, %12 : vector<16x1xf32>
    %cst_6 = arith.constant 9.99999974E-6 : f32
    %14 = vector.broadcast %cst_6 : f32 to vector<16x1xf32>
    %15 = arith.addf %13, %14 : vector<16x1xf32>
    %16 = math.rsqrt %15 : vector<16x1xf32>
    %c0_7 = arith.constant 0 : index
    %c0_8 = arith.constant 0 : index
    %17 = vector.load %arg3[%c0_7, %c0_8] : memref<2x32xf32, #tpu.memory_space<vmem>>, vector<1x32xf32>
    %c1 = arith.constant 1 : index
    %c0_9 = arith.constant 0 : index
    %18 = vector.load %arg3[%c1, %c0_9] : memref<2x32xf32, #tpu.memory_space<vmem>>, vector<1x32xf32>
    %19 = vector.broadcast %16 : vector<16x1xf32> to vector<16x32xf32>
    %20 = arith.mulf %8, %19 : vector<16x32xf32>
    %21 = vector.broadcast %17 : vector<1x32xf32> to vector<16x32xf32>
    %22 = arith.mulf %20, %21 : vector<16x32xf32>
    %23 = vector.broadcast %18 : vector<1x32xf32> to vector<16x32xf32>
    %24 = arith.addf %22, %23 : vector<16x32xf32>
    %c0_10 = arith.constant 0 : index
    %c0_11 = arith.constant 0 : index
    %25 = vector.load %arg4[%c0_10, %c0_11] : memref<16x32xf32, #tpu.memory_space<vmem>>, vector<16x32xf32>
    tpu.vector_store %arg4[%c0_10, %c0_11], %24 {strides = array<i32>} : memref<16x32xf32, #tpu.memory_space<vmem>>, vector<16x32xf32>,
    return
  }
  func.func @transform_0(%arg0: i32) -> (i32, i32) {
    %c0_i32 = arith.constant 0 : i32
    %c0_i32_0 = arith.constant 0 : i32
    return %arg0, %c0_i32 : i32, i32
  }
  func.func @transform_1(%arg0: i32) -> (i32, i32) {
    %c0_i32 = arith.constant 0 : i32
    %c0_i32_0 = arith.constant 0 : i32
    return %arg0, %c0_i32 : i32, i32
  }
  func.func @transform_2(%arg0: i32) -> (i32, i32) {
    %c0_i32 = arith.constant 0 : i32
    %c0_i32_0 = arith.constant 0 : i32
    %c0_i32_1 = arith.constant 0 : i32
    return %c0_i32, %c0_i32_0 : i32, i32
  }
  func.func @transform_3(%arg0: i32) -> (i32, i32) {
    %c0_i32 = arith.constant 0 : i32
    %c0_i32_0 = arith.constant 0 : i32
    return %arg0, %c0_i32 : i32, i32
  }
}

</mosaic_0001>

<bundles_post_ra>
// kernel: tpu_custom_call.1
= control target key start
LH: loop header
LB: loop body
LE: loop exit
PB: predicated region body
PF: predicated region fallthrough
CT: control target
= control target key end

     0   :  { %8 = vsyncpa [#allocation3], 0  ;;  %s323_s0 = inlined_call_operand.hbm [shape: f32[16,32], index: 0, kind: input, shape index: {}]   ;;  %s324_s1 = inlined_call_operand.hbm [shape: f32[16,32], index: 1, kind: input, shape index: {}]   ;;  %s325_s2 = inlined_call_operand.hbm [shape: f32[2,32], index: 2, kind: input, shape index: {}]   ;;  %s326_s3 = inlined_call_operand.hbm [shape: f32[16,32], index: 3, kind: output, shape index: {}]  }
   0x1   :  { %9 = vsyncpa [#allocation6], 0 }
   0x2   :  { %10 = vsyncpa [#allocation4], 0  ;;  %s227_s12 = smov [#allocation5]   ;;  %s228_s14 = smov [#allocation2]  }
   0x3   :  { %s28_s13 = sshll.u32 %s227_s12, 4  ;;  %s16_s15 = sshll.u32 %s228_s14, 4  ;;  %s29_s13 = int_to_ptr.vmem [resolvable:$true] %s28_s13  ;;  %s253_s15 = int_to_ptr.vmem [resolvable:$true] %s16_s15 }
   0x4   :  { %s133_s18 = scalar_lea.hbm %s324_s1, 256 }
   0x5   :  { %p134_p0 = scmp.ne.s32.totalorder %s324_s1, %s133_s18  ;;  %p137_p1 = scmp.lt.u32.totalorder %s133_s18, %s324_s1 }
   0x7   :  { %p139_p2 = pnand %p137_p1, %p134_p0 }
   0x9   :  { %142 = shalt.err (!%p139_p2)
}
   0xa   :  { %s143_s23 = scalar_lea.vmem %s29_s13, 256  ;;  %p148_p4 = scmp.lt.s32.totalorder %s29_s13, %s29_s13 }
   0xb   :  { %p144_p3 = scmp.ne.s32.totalorder %s29_s13, %s143_s23  ;;  %p149_p5 = scmp.lt.s32.totalorder %s143_s23, %s143_s23 }
   0xd   :  { %p150_p6 = por %p149_p5, %p148_p4 }
   0xf   :  { %p151_p7 = pnand %p150_p6, %p144_p3 }
  0x11   :  { %154 = shalt.err (!%p151_p7)
}
  0x12   :  { %s229_s24 = smov 128   ;;  %s230_s25 = smov 8  }
  0x13   :  { %34 = dma.hbm_to_vmem [thread:$0]  %s324_s1, 256, %s29_s13, [#allocation6], %s229_s24, %s229_s24, %s230_s25  }
  0x14   :  { %s155_s30 = scalar_lea.hbm %s323_s0, 256 }
  0x15   :  { %p156_p8 = scmp.ne.s32.totalorder %s323_s0, %s155_s30  ;;  %p159_p9 = scmp.lt.u32.totalorder %s155_s30, %s323_s0 }
  0x17   :  { %p161_p10 = pnand %p159_p9, %p156_p8 }
  0x19   :  { %164 = shalt.err (!%p161_p10)
}
  0x1a   :  { %s165_s8 = scalar_lea.vmem %s253_s15, 256  ;;  %p170_p12 = scmp.lt.s32.totalorder %s253_s15, %s253_s15 }
  0x1b   :  { %p166_p11 = scmp.ne.s32.totalorder %s253_s15, %s165_s8  ;;  %p171_p13 = scmp.lt.s32.totalorder %s165_s8, %s165_s8 }
  0x1d   :  { %p172_p0 = por %p171_p13, %p170_p12 }
  0x1f   :  { %p173_p1 = pnand %p172_p0, %p166_p11 }
  0x21   :  { %176 = shalt.err (!%p173_p1)
}
  0x22   :  { %22 = dma.hbm_to_vmem [thread:$0]  %s323_s0, 256, %s253_s15, [#allocation3], %s229_s24, %s229_s24, %s230_s25  }
  0x23   :  { %s231_s10 = smov [#allocation7]   ;;  %s177_s14 = scalar_lea.hbm %s325_s2, 32 }
  0x24   :  { %s41_s11 = sshll.u32 %s231_s10, 4  ;;  %p178_p2 = scmp.ne.s32.totalorder %s325_s2, %s177_s14  ;;  %s42_s11 = int_to_ptr.vmem [resolvable:$true] %s41_s11 }
  0x25   :  { %p181_p3 = scmp.lt.u32.totalorder %s177_s14, %s325_s2 }
  0x27   :  { %p183_p4 = pnand %p181_p3, %p178_p2 }
  0x29   :  { %186 = shalt.err (!%p183_p4)
}
  0x2a   :  { %s187_s20 = scalar_lea.vmem %s42_s11, 32  ;;  %p192_p6 = scmp.lt.s32.totalorder %s42_s11, %s42_s11 }
  0x2b   :  { %p188_p5 = scmp.ne.s32.totalorder %s42_s11, %s187_s20  ;;  %p193_p7 = scmp.lt.s32.totalorder %s187_s20, %s187_s20 }
  0x2d   :  { %p194_p8 = por %p193_p7, %p192_p6 }
  0x2f   :  { %p195_p9 = pnand %p194_p8, %p188_p5 }
  0x31   :  { %198 = shalt.err (!%p195_p9)
}
  0x32   :  { %44 = dma.hbm_to_vmem [thread:$0]  %s325_s2, 32, %s42_s11, [#allocation6]  }
  0x33   :  { %221 = dma.done.wait [#allocation3], 256  }
  0x34   :  { %222 = vsyncadd [#allocation3], 4294967040 }
  0x35   :  { %223 = dma.done.wait [#allocation6], 288  }
  0x36   :  { %224 = vsyncadd [#allocation6], 4294967008  ;;  %v54_v0 = vld [vmem:[#allocation2] sm:$0xff]  ;;  %v56_v1 = vld [vmem:[#allocation5] sm:$0xff]  ;;  %vm60_vm0 = vcmask 261120   ;;  %s232_s2 = smov [#allocation8]  }
  0x37   :  { %v55_v2 = vld [vmem:[#allocation2 + $0x8] sm:$0xff]  ;;  %v58_v3 = vadd.f32 %v56_v1, %v54_v0  ;;  %v57_v4 = vld [vmem:[#allocation5 + $0x8] sm:$0xff]  ;;  %v121_v25 = vld [vmem:[#allocation7] ss:$0 sm:$0xff]  ;;  %s108_s21 = sshll.u32 %s232_s2, 4  ;;  %s109_s21 = int_to_ptr.vmem [resolvable:$true] %s108_s21 }
  0x38   :  { %v59_v5 = vadd.f32 %v57_v4, %v55_v2  ;;  %v122_v27 = vld [vmem:[#allocation7 + $0x1] ss:$0 sm:$0xff]  ;;  %s199_s22 = scalar_lea.vmem %s109_s21, 256  ;;  %p204_p11 = scmp.lt.s32.totalorder %s109_s21, %s109_s21 }
  0x39   :  { %v61_v6 = vsel %vm60_vm0, %v58_v3, 0.0  ;;  %p200_p10 = scmp.ne.s32.totalorder %s109_s21, %s199_s22  ;;  %p205_p12 = scmp.lt.s32.totalorder %s199_s22, %s199_s22 }
  0x3a   :  { %62 = vadd.xlane.f32.xlu0 %v61_v6  ;;  %v64_v7 = vsel %vm60_vm0, %v59_v5, 0.0 }
  0x3b   :  { %p206_p13 = por %p205_p12, %p204_p11 }
  0x3d   :  { %p207_p0 = pnand %p206_p13, %p200_p10 }
  0x3e   :  { %65 = vadd.xlane.f32.xlu0 %v64_v7 }
  0xc7   :  { %v63_v8 = vpop.xlane.xlu0 %62 }
  0xc8   :  { %v67_v9 = vmul.f32 0.03125, %v63_v8 }
  0xca   :  { %v69_v10 = vsub.f32 %v58_v3, %v67_v9 }
  0xcb   :  { %v66_v11 = vpop.xlane.xlu0 %65 }
  0xcc   :  { %v68_v12 = vmul.f32 0.03125, %v66_v11  ;;  %v71_v13 = vmul.f32 %v69_v10, %v69_v10 }
  0xce   :  { %v70_v14 = vsub.f32 %v59_v5, %v68_v12  ;;  %v73_v15 = vsel %vm60_vm0, %v71_v13, 0.0 }
  0xcf   :  { %74 = vadd.xlane.f32.xlu1 %v73_v15 }
  0xd0   :  { %v72_v16 = vmul.f32 %v70_v14, %v70_v14 }
  0xd2   :  { %v76_v17 = vsel %vm60_vm0, %v72_v16, 0.0 }
  0xd3   :  { %77 = vadd.xlane.f32.xlu1 %v76_v17 }
 0x15c   :  { %v75_v18 = vpop.xlane.xlu1 %74 }
 0x15d   :  { %v79_v19 = vmul.f32 0.03125, %v75_v18 }
 0x15f   :  { %v81_v20 = vadd.f32 1e-05, %v79_v19 }
 0x160   :  { %v78_v21 = vpop.xlane.xlu1 %77 }
 0x161   :  { %129 = vrsqrt.f32 %v81_v20  ;;  %v80_v22 = vmul.f32 0.03125, %v78_v21 }
 0x163   :  { %v82_v23 = vadd.f32 1e-05, %v80_v22 }
 0x165   :  { %131 = vrsqrt.f32 %v82_v23 }
 0x16b   :  { %v130_v24 = vpop.eup %129 }
 0x16c   :  { %v87_v26 = vmul.f32 %v130_v24, %v69_v10 }
 0x16e   :  { %v93_v28 = vmul.f32 %v121_v25, %v87_v26 }
 0x16f   :  { %v132_v29 = vpop.eup %131 }
 0x170   :  { %v88_v30 = vmul.f32 %v132_v29, %v70_v14  ;;  %v99_v31 = vadd.f32 %v122_v27, %v93_v28 }
 0x172   :  { %v94_v32 = vmul.f32 %v121_v25, %v88_v30  ;;  %101 = vst.msk [vmem:[#allocation8] sm:$0xff] %vm60_vm0, %v99_v31 }
 0x174   :  { %v100_v33 = vadd.f32 %v122_v27, %v94_v32 }
 0x176   :  { %102 = vst.msk [vmem:[#allocation8 + $0x8] sm:$0xff] %vm60_vm0, %v100_v33 }
 0x177   :  { %210 = shalt.err (!%p207_p0)
}
 0x178   :  { %s211_s27 = scalar_lea.hbm %s326_s3, 256 }
 0x179   :  { %p212_p1 = scmp.ne.s32.totalorder %s326_s3, %s211_s27  ;;  %p215_p2 = scmp.lt.u32.totalorder %s211_s27, %s326_s3 }
 0x17b   :  { %p217_p3 = pnand %p215_p2, %p212_p1 }
 0x17d   :  { %220 = shalt.err (!%p217_p3)
}
 0x17e   :  { %114 = dma.vmem_to_hbm [thread:$0]  %s109_s21, 256, %s326_s3, [#allocation4], %s229_s24, %s229_s24, %s230_s25  }
 0x17f   :  { %225 = dma.done.wait [#allocation4], 256  }
 0x180   :  { %226 = vsyncadd [#allocation4], 4294967040 }
 0x181   :  { %118 = vsyncpa [#allocation3], 1 }
 0x182   :  { %119 = vsyncpa [#allocation6], 1 }
 0x183   :  { %120 = vsyncpa [#allocation4], 1 }

</bundles_post_ra>
